<compile_context>
chip_gen: v5e
topology: v5e:2x2
jax: 0.10.0
libtpu: 0.0.40
codegen_flags: <defaults>
</compile_context>

<pallas_src>
import jax
import jax.numpy as jnp
from jax.experimental import pallas as pl
from jax.experimental.pallas import tpu as pltpu

SUBLANE = 8
LANE = 128


def _round_up(x, m):
    return ((x + m - 1) // m) * m


# ---------------------------------------------------------------------------
# Pallas kernel: full Actor forward (split-input MLP + tanh perturbation + clamp)
# ---------------------------------------------------------------------------
def _actor_kernel(ma_ref, state_ref, action_ref, mdp_ref, *refs):
    """refs = (W0_s, W0_a, W0_m, b0, W1, b1, ..., Wout, bout, out_ref).

    Weights are (in_features_padded, out_features_padded); biases (1, out_padded).
    """
    out_ref = refs[-1]
    wbs = refs[:-1]
    max_action = ma_ref[0]

    # First layer: fused concat -> three partial matmuls + bias, then relu.
    h = (
        jnp.dot(state_ref[...], wbs[0][...], preferred_element_type=jnp.float32)
        + jnp.dot(action_ref[...], wbs[1][...], preferred_element_type=jnp.float32)
        + jnp.dot(mdp_ref[...], wbs[2][...], preferred_element_type=jnp.float32)
        + wbs[3][...]
    )
    h = jnp.maximum(h, 0.0)

    # Remaining layers: hidden layers with relu, output layer without.
    rest = wbs[4:]
    n_rest = len(rest) // 2
    for li in range(n_rest):
        w = rest[2 * li][...]
        b = rest[2 * li + 1][...]
        h = jnp.dot(h, w, preferred_element_type=jnp.float32) + b
        if li < n_rest - 1:
            h = jnp.maximum(h, 0.0)

    perturbation = jnp.tanh(h) * max_action
    out = action_ref[...] + 0.05 * perturbation
    out_ref[...] = jnp.clip(out, -max_action, max_action)


# ---------------------------------------------------------------------------
# One-time parameter preparation (outside the per-call path)
# ---------------------------------------------------------------------------
def prepare_actor_params(params, state_dim, action_dim, encoder_latent_dim, lane=LANE):
    """Convert a list of (W, b) (W: (in, out), b: (out,)) into kernel-ready arrays:

      * split the first-layer weight along its input dim into state/action/mdp
        blocks (fuses the concat into the kernel),
      * zero-pad every out-feature dim (and the matching in-dims of subsequent
        layers, and the action block's in-dim) up to a multiple of 128 lanes,
      * cast to f32 and reshape biases to (1, out).

    Zero padding is exact: padded hidden units stay 0 through relu, padded
    output lanes produce tanh(0)*max_action = 0 and are sliced away.
    """
    ws = [jnp.asarray(w, jnp.float32) for (w, _) in params]
    bs = [jnp.asarray(b, jnp.float32) for (_, b) in params]

    a_pad = _round_up(action_dim, lane)

    padded_ws, padded_bs = [], []
    prev_out_pad = None
    for i, (w, b) in enumerate(zip(ws, bs)):
        in_dim, out_dim = w.shape
        out_pad = _round_up(out_dim, lane)
        in_pad = in_dim if i == 0 else prev_out_pad
        w_p = jnp.zeros((in_pad, out_pad), jnp.float32).at[:in_dim, :out_dim].set(w)
        b_p = jnp.zeros((1, out_pad), jnp.float32).at[0, :out_dim].set(b)
        padded_ws.append(w_p)
        padded_bs.append(b_p)
        prev_out_pad = out_pad

    # Split first-layer weight into state / action / mdp blocks.
    s, a, m = state_dim, action_dim, encoder_latent_dim
    w0 = padded_ws[0]
    h0_pad = w0.shape[1]
    w0_s = w0[:s, :]
    w0_a = jnp.zeros((a_pad, h0_pad), jnp.float32).at[:a, :].set(w0[s:s + a, :])
    w0_m = w0[s + a:s + a + m, :]

    flat = [w0_s, w0_a, w0_m, padded_bs[0]]
    for w_p, b_p in zip(padded_ws[1:], padded_bs[1:]):
        flat.extend([w_p, b_p])
    return tuple(flat)


# ---------------------------------------------------------------------------
# Jitted forward wrapper
# ---------------------------------------------------------------------------
@jax.jit
def actor_forward(state, action, inferred_mdp, flat_params, max_action):
    """state (B,S), action (B,A), inferred_mdp (B,L); flat_params from
    prepare_actor_params(); max_action is a traced scalar (no retrace on value
    change — it rides into the kernel through SMEM)."""
    state = state.astype(jnp.float32)
    action = action.astype(jnp.float32)
    mdp = inferred_mdp.astype(jnp.float32)

    B, A = action.shape
    a_pad = flat_params[1].shape[0]       # padded in-dim of the action block of W0
    out_pad = flat_params[-1].shape[1]    # padded output feature dim (== a_pad)
    b_pad = _round_up(B, SUBLANE)

    # Pad batch to a sublane multiple; pad action lanes to the padded action dim.
    state_p = jnp.pad(state, ((0, b_pad - B), (0, 0)))
    mdp_p = jnp.pad(mdp, ((0, b_pad - B), (0, 0)))
    action_p = jnp.pad(action, ((0, b_pad - B), (0, a_pad - A)))

    ma = jnp.asarray(max_action, jnp.float32).reshape(1)

    vmem_spec = pl.BlockSpec(memory_space=pltpu.MemorySpace.VMEM)
    smem_spec = pl.BlockSpec(memory_space=pltpu.MemorySpace.SMEM)
    n_vmem_inputs = 3 + len(flat_params)

    out = pl.pallas_call(
        _actor_kernel,
        out_shape=jax.ShapeDtypeStruct((b_pad, out_pad), jnp.float32),
        in_specs=[smem_spec] + [vmem_spec] * n_vmem_inputs,
        out_specs=vmem_spec,
    )(ma, state_p, action_p, mdp_p, *flat_params)

    return out[:B, :A]


# ---------------------------------------------------------------------------
# Deterministic parameter init (PyTorch nn.Linear-style uniform bounds)
# ---------------------------------------------------------------------------
def init_actor_params(key, state_dim, action_dim, encoder_latent_dim, hid_sizes):
    dims = [state_dim + action_dim + encoder_latent_dim] + list(hid_sizes) + [action_dim]
    params = []
    for i in range(len(dims) - 1):
        fan_in, fan_out = dims[i], dims[i + 1]
        key, kw, kb = jax.random.split(key, 3)
        bound = 1.0 / jnp.sqrt(fan_in)
        w = jax.random.uniform(kw, (fan_in, fan_out), jnp.float32, -bound, bound)
        b = jax.random.uniform(kb, (fan_out,), jnp.float32, -bound, bound)
        params.append((w, b))
    return params


# ---------------------------------------------------------------------------
# Pure-JAX reference for sanity checking (uses the original, unpadded params)
# ---------------------------------------------------------------------------
def actor_forward_ref(state, action, inferred_mdp, params, max_action):
    h = jnp.concatenate([state, action, inferred_mdp], axis=1)
    for i, (w, b) in enumerate(params):
        h = h @ w + b
        if i < len(params) - 1:
            h = jnp.maximum(h, 0.0)
    pert = jnp.tanh(h) * max_action
    return jnp.clip(action + 0.05 * pert, -max_action, max_action)


if __name__ == "__main__":
    batch = 2
    state_dim = 16
    action_dim = 8
    encoder_latent_dim = 8
    hid_sizes = [32, 32]
    max_action = 1.0

    key = jax.random.PRNGKey(0)
    k_s, k_a, k_m, k_p = jax.random.split(key, 4)

    state = jax.random.normal(k_s, (batch, state_dim), jnp.float32)
    action = jnp.clip(
        jax.random.normal(k_a, (batch, action_dim), jnp.float32), -max_action, max_action
    )
    inferred_mdp = jax.random.normal(k_m, (batch, encoder_latent_dim), jnp.float32)

    params = init_actor_params(k_p, state_dim, action_dim, encoder_latent_dim, hid_sizes)

    # One-time prep: split/pad/cast weights so the per-call path is just the
    # jitted pallas_call.
    flat_params = prepare_actor_params(params, state_dim, action_dim, encoder_latent_dim)

    out = actor_forward(state, action, inferred_mdp, flat_params, max_action)
    out = jax.block_until_ready(out)

    ref = actor_forward_ref(state, action, inferred_mdp, params, max_action)
    assert out.shape == (batch, action_dim)
    assert jnp.allclose(out, ref, atol=1e-5, rtol=1e-5)

    print("KERNEL_OK")
</pallas_src>

<mosaic_0001>
module attributes {stable_mosaic.version = 11 : i64} {
  func.func @_actor_kernel(%arg0: memref<1xf32, #tpu.memory_space<smem>>, %arg1: memref<8x16xf32, #tpu.memory_space<vmem>>, %arg2: memref<8x128xf32, #tpu.memory_space<vmem>>, %arg3: memref<8x8xf32, #tpu.memory_space<vmem>>, %arg4: memref<16x128xf32, #tpu.memory_space<vmem>>, %arg5: memref<128x128xf32, #tpu.memory_space<vmem>>, %arg6: memref<8x128xf32, #tpu.memory_space<vmem>>, %arg7: memref<1x128xf32, #tpu.memory_space<vmem>>, %arg8: memref<128x128xf32, #tpu.memory_space<vmem>>, %arg9: memref<1x128xf32, #tpu.memory_space<vmem>>, %arg10: memref<128x128xf32, #tpu.memory_space<vmem>>, %arg11: memref<1x128xf32, #tpu.memory_space<vmem>>, %arg12: memref<8x128xf32, #tpu.memory_space<vmem>>) attributes {dimension_semantics = [], scalar_prefetch = 0 : i64, scratch_operands = 0 : i64, tpu.core_type = #tpu.core_type<tc>} {
    %c0 = arith.constant 0 : index
    %0 = memref.load %arg0[%c0] : memref<1xf32, #tpu.memory_space<smem>>
    %c0_0 = arith.constant 0 : index
    %c0_1 = arith.constant 0 : index
    %1 = vector.load %arg1[%c0_0, %c0_1] : memref<8x16xf32, #tpu.memory_space<vmem>>, vector<8x16xf32>
    %c0_2 = arith.constant 0 : index
    %c0_3 = arith.constant 0 : index
    %2 = vector.load %arg4[%c0_2, %c0_3] : memref<16x128xf32, #tpu.memory_space<vmem>>, vector<16x128xf32>
    %cst = arith.constant dense<0.000000e+00> : vector<8x128xf32>
    %3 = tpu.matmul %1, %2, %cst {dimension_numbers = #tpu.dot_dimension_numbers<[1], [0], [0], [1], [0, 0, 1, 1], [], []>} : vector<8x16xf32>, vector<16x128xf32>, vector<8x128xf32> -> vector<8x128xf32>
    %c0_4 = arith.constant 0 : index
    %c0_5 = arith.constant 0 : index
    %4 = vector.load %arg2[%c0_4, %c0_5] : memref<8x128xf32, #tpu.memory_space<vmem>>, vector<8x128xf32>
    %c0_6 = arith.constant 0 : index
    %c0_7 = arith.constant 0 : index
    %5 = vector.load %arg5[%c0_6, %c0_7] : memref<128x128xf32, #tpu.memory_space<vmem>>, vector<128x128xf32>
    %cst_8 = arith.constant dense<0.000000e+00> : vector<8x128xf32>
    %6 = tpu.matmul %4, %5, %cst_8 {dimension_numbers = #tpu.dot_dimension_numbers<[1], [0], [0], [1], [0, 0, 1, 1], [], []>} : vector<8x128xf32>, vector<128x128xf32>, vector<8x128xf32> -> vector<8x128xf32>
    %7 = arith.addf %3, %6 : vector<8x128xf32>
    %c0_9 = arith.constant 0 : index
    %c0_10 = arith.constant 0 : index
    %8 = vector.load %arg3[%c0_9, %c0_10] : memref<8x8xf32, #tpu.memory_space<vmem>>, vector<8x8xf32>
    %c0_11 = arith.constant 0 : index
    %c0_12 = arith.constant 0 : index
    %9 = vector.load %arg6[%c0_11, %c0_12] : memref<8x128xf32, #tpu.memory_space<vmem>>, vector<8x128xf32>
    %cst_13 = arith.constant dense<0.000000e+00> : vector<8x128xf32>
    %10 = tpu.matmul %8, %9, %cst_13 {dimension_numbers = #tpu.dot_dimension_numbers<[1], [0], [0], [1], [0, 0, 1, 1], [], []>} : vector<8x8xf32>, vector<8x128xf32>, vector<8x128xf32> -> vector<8x128xf32>
    %11 = arith.addf %7, %10 : vector<8x128xf32>
    %c0_14 = arith.constant 0 : index
    %c0_15 = arith.constant 0 : index
    %12 = vector.load %arg7[%c0_14, %c0_15] : memref<1x128xf32, #tpu.memory_space<vmem>>, vector<1x128xf32>
    %13 = vector.broadcast %12 : vector<1x128xf32> to vector<8x128xf32>
    %14 = arith.addf %11, %13 : vector<8x128xf32>
    %cst_16 = arith.constant 0.000000e+00 : f32
    %15 = vector.broadcast %cst_16 : f32 to vector<8x128xf32>
    %16 = arith.maximumf %14, %15 : vector<8x128xf32>
    %c0_17 = arith.constant 0 : index
    %c0_18 = arith.constant 0 : index
    %17 = vector.load %arg8[%c0_17, %c0_18] : memref<128x128xf32, #tpu.memory_space<vmem>>, vector<128x128xf32>
    %c0_19 = arith.constant 0 : index
    %c0_20 = arith.constant 0 : index
    %18 = vector.load %arg9[%c0_19, %c0_20] : memref<1x128xf32, #tpu.memory_space<vmem>>, vector<1x128xf32>
    %cst_21 = arith.constant dense<0.000000e+00> : vector<8x128xf32>
    %19 = tpu.matmul %16, %17, %cst_21 {dimension_numbers = #tpu.dot_dimension_numbers<[1], [0], [0], [1], [0, 0, 1, 1], [], []>} : vector<8x128xf32>, vector<128x128xf32>, vector<8x128xf32> -> vector<8x128xf32>
    %20 = vector.broadcast %18 : vector<1x128xf32> to vector<8x128xf32>
    %21 = arith.addf %19, %20 : vector<8x128xf32>
    %cst_22 = arith.constant 0.000000e+00 : f32
    %22 = vector.broadcast %cst_22 : f32 to vector<8x128xf32>
    %23 = arith.maximumf %21, %22 : vector<8x128xf32>
    %c0_23 = arith.constant 0 : index
    %c0_24 = arith.constant 0 : index
    %24 = vector.load %arg10[%c0_23, %c0_24] : memref<128x128xf32, #tpu.memory_space<vmem>>, vector<128x128xf32>
    %c0_25 = arith.constant 0 : index
    %c0_26 = arith.constant 0 : index
    %25 = vector.load %arg11[%c0_25, %c0_26] : memref<1x128xf32, #tpu.memory_space<vmem>>, vector<1x128xf32>
    %cst_27 = arith.constant dense<0.000000e+00> : vector<8x128xf32>
    %26 = tpu.matmul %23, %24, %cst_27 {dimension_numbers = #tpu.dot_dimension_numbers<[1], [0], [0], [1], [0, 0, 1, 1], [], []>} : vector<8x128xf32>, vector<128x128xf32>, vector<8x128xf32> -> vector<8x128xf32>
    %27 = vector.broadcast %25 : vector<1x128xf32> to vector<8x128xf32>
    %28 = arith.addf %26, %27 : vector<8x128xf32>
    %29 = math.tanh %28 : vector<8x128xf32>
    %30 = vector.broadcast %0 : f32 to vector<8x128xf32>
    %31 = arith.mulf %29, %30 : vector<8x128xf32>
    %c0_28 = arith.constant 0 : index
    %c0_29 = arith.constant 0 : index
    %32 = vector.load %arg2[%c0_28, %c0_29] : memref<8x128xf32, #tpu.memory_space<vmem>>, vector<8x128xf32>
    %cst_30 = arith.constant 5.000000e-02 : f32
    %33 = vector.broadcast %cst_30 : f32 to vector<8x128xf32>
    %34 = arith.mulf %33, %31 : vector<8x128xf32>
    %35 = arith.addf %32, %34 : vector<8x128xf32>
    %cst_31 = arith.constant 0.000000e+00 : f32
    %36 = arith.subf %cst_31, %0 : f32
    %37 = vector.broadcast %36 : f32 to vector<8x128xf32>
    %38 = arith.maximumf %37, %35 : vector<8x128xf32>
    %39 = vector.broadcast %0 : f32 to vector<8x128xf32>
    %40 = arith.minimumf %39, %38 : vector<8x128xf32>
    %c0_32 = arith.constant 0 : index
    %c0_33 = arith.constant 0 : index
    %41 = vector.load %arg12[%c0_32, %c0_33] : memref<8x128xf32, #tpu.memory_space<vmem>>, vector<8x128xf32>
    tpu.vector_store %arg12[%c0_32, %c0_33], %40 {strides = array<i32>} : memref<8x128xf32, #tpu.memory_space<vmem>>, vector<8x128xf32>,
    return
  }
}

</mosaic_0001>

<bundles_post_ra>
// kernel: actor_forward.1
= control target key start
LH: loop header
LB: loop body
LE: loop exit
PB: predicated region body
PF: predicated region fallthrough
CT: control target
= control target key end

     0   :  { %18 = vsyncpa [#allocation4], 0  ;;  %s491_s0 = inlined_call_operand.<no memory space> [shape: f32[1], index: 0, kind: input, shape index: {}]   ;;  %s492_s1 = inlined_call_operand.vmem [shape: f32[8,16], index: 1, kind: input, shape index: {}]   ;;  %s493_s2 = inlined_call_operand.vmem [shape: f32[8,128], index: 2, kind: input, shape index: {}]   ;;  %s494_s3 = inlined_call_operand.vmem [shape: f32[8,8], index: 3, kind: input, shape index: {}]   ;;  %s495_s4 = inlined_call_operand.vmem [shape: f32[16,128], index: 4, kind: input, shape index: {}]   ;;  %s496_s5 = inlined_call_operand.hbm [shape: f32[128,128], index: 5, kind: input, shape index: {}]   ;;  %s497_s6 = inlined_call_operand.vmem [shape: f32[8,128], index: 6, kind: input, shape index: {}]   ;;  %s498_s7 = inlined_call_operand.vmem [shape: f32[1,128], index: 7, kind: input, shape index: {}]   ;;  %s499_s8 = inlined_call_operand.hbm [shape: f32[128,128], index: 8, kind: input, shape index: {}]   ;;  %s500_s9 = inlined_call_operand.vmem [shape: f32[1,128], index: 9, kind: input, shape index: {}]   ;;  %s501_s10 = inlined_call_operand.hbm [shape: f32[128,128], index: 10, kind: input, shape index: {}]   ;;  %s502_s11 = inlined_call_operand.vmem [shape: f32[1,128], index: 11, kind: input, shape index: {}]   ;;  %s503_s12 = inlined_call_operand.vmem [shape: f32[8,128], index: 12, kind: output, shape index: {}]  }
   0x1   :  { %19 = vsyncpa [#allocation6], 0  ;;  %s51_s23 = sshll.u32 %s499_s8, 4  ;;  %s372_s24 = smov [#allocation5]   ;;  %s52_s23 = int_to_ptr.hbm [resolvable:$true] %s51_s23 }
   0x2   :  { %s53_s25 = sshll.u32 %s372_s24, 4  ;;  %s34_s28 = sshll.u32 %s496_s5, 4  ;;  %s54_s25 = int_to_ptr.vmem [resolvable:$true] %s53_s25  ;;  %s35_s28 = int_to_ptr.hbm [resolvable:$true] %s34_s28 }
   0x3   :  { %s373_s29 = smov 128   ;;  %s374_s30 = smov 8  }
   0x4   :  { %59 = dma.hbm_to_vmem [thread:$0]  %s52_s23, 2048, %s54_s25, [#allocation6], %s373_s29, %s373_s29, %s374_s30  }
   0x5   :  { %s375_s13 = smov [#allocation3]   ;;  %s66_s17 = sshll.u32 %s501_s10, 4  ;;  %s67_s17 = int_to_ptr.hbm [resolvable:$true] %s66_s17 }
   0x6   :  { %s36_s14 = sshll.u32 %s375_s13, 4  ;;  %s376_s8 = smov [#allocation7]   ;;  %s37_s14 = int_to_ptr.vmem [resolvable:$true] %s36_s14 }
   0x7   :  { %42 = dma.hbm_to_vmem [thread:$0]  %s35_s28, 2048, %s37_s14, [#allocation4], %s373_s29, %s373_s29, %s374_s30  }
   0x8   :  { %s68_s18 = sshll.u32 %s376_s8, 4  ;;  %s69_s18 = int_to_ptr.vmem [resolvable:$true] %s68_s18 }
   0x9   :  { %74 = dma.hbm_to_vmem [thread:$0]  %s67_s17, 2048, %s69_s18, [#allocation6], %s373_s29, %s373_s29, %s374_s30  }
   0xa   :  { %368 = dma.done.wait [#allocation4], 2048  }
   0xb   :  { %369 = vsyncadd [#allocation4], 4294965248 }
   0xc   :  { %370 = dma.done.wait [#allocation6], 4096  }
   0xd   :  { %371 = vsyncadd [#allocation6], 4294963200  ;;  %v109_v0 = vld [vmem:[#allocation3 + $0x78] sm:$0xff]  ;;  %v108_v1 = vld [vmem:[#allocation3 + $0x70] sm:$0xff]  ;;  %vm130_vm0 = vcmask 130048   ;;  %vm156_vm1 = vcmask 64512  }
   0xe   :  { %110 = vmatpush.msra.mxu0 %v109_v0  ;;  %v107_v2 = vld [vmem:[#allocation3 + $0x68] sm:$0xff]  ;;  %v106_v3 = vld [vmem:[#allocation3 + $0x60] sm:$0xff]  ;;  %v105_v7 = vld [vmem:[#allocation3 + $0x58] sm:$0xff] }
   0xf   :  { %v92_v4 = vld [vmem:[%s495_s4 + $0x8] sm:$0xff]  ;;  %v91_v5 = vld [vmem:[%s495_s4] sm:$0xff]  ;;  %v202_v9 = vld [vmem:[#allocation5 + $0x78] sm:$0xff] }
  0x10   :  { %111 = vmatpush.msra.mxu0 %v108_v1  ;;  %148 = vmatpush.msra.mxu1 %v92_v4  ;;  %v90_v6 = vld [vmem:[%s492_s1] sm:$0xff]  ;;  %v201_v10 = vld [vmem:[#allocation5 + $0x70] sm:$0xff]  ;;  %v103_v12 = vld [vmem:[#allocation3 + $0x48] sm:$0xff] }
  0x11   :  { %v155_v8 = vld [vmem:[%s497_s6] sm:$0xff]  ;;  %v104_v11 = vld [vmem:[#allocation3 + $0x50] sm:$0xff]  ;;  %207 = vmatpush.msra.mxu3 %v202_v9  ;;  %v200_v13 = vld [vmem:[#allocation5 + $0x68] sm:$0xff] }
  0x12   :  { %112 = vmatpush.msra.mxu0 %v107_v2  ;;  %149 = vmatpush.msra.mxu1 %v91_v5  ;;  %v199_v14 = vld [vmem:[#allocation5 + $0x60] sm:$0xff]  ;;  %v198_v17 = vld [vmem:[#allocation5 + $0x58] sm:$0xff]  ;;  %v197_v19 = vld [vmem:[#allocation5 + $0x50] sm:$0xff]  ;;  %v269_v5 = vstv %s491_s0 }
  0x13   :  { %284 = vmatmul.msk.f32.vlgmr.msra.gmra.mxu1 %vm130_vm0, %v90_v6  ;;  %208 = vmatpush.msra.mxu3 %v201_v10  ;;  %v102_v15 = vld [vmem:[#allocation3 + $0x40] sm:$0xff]  ;;  %v101_v18 = vld [vmem:[#allocation3 + $0x38] sm:$0xff]  ;;  %v100_v20 = vld [vmem:[#allocation3 + $0x30] sm:$0xff] }
  0x14   :  { %113 = vmatpush.msra.mxu0 %v106_v3  ;;  %175 = vmatpush.msrb.mxu1 %v155_v8  ;;  %v154_v16 = vld [vmem:[%s494_s3] sm:$0xff]  ;;  %v196_v21 = vld [vmem:[#allocation5 + $0x48] sm:$0xff]  ;;  %v97_v25 = vld [vmem:[#allocation3 + $0x18] sm:$0xff] }
  0x15   :  { %209 = vmatpush.msra.mxu3 %v200_v13  ;;  %v99_v22 = vld [vmem:[#allocation3 + $0x28] sm:$0xff]  ;;  %v195_v23 = vld [vmem:[#allocation5 + $0x40] sm:$0xff]  ;;  %v96_v26 = vld [vmem:[#allocation3 + $0x10] sm:$0xff] }
  0x16   :  { %114 = vmatpush.msra.mxu0 %v105_v7  ;;  %v98_v24 = vld [vmem:[#allocation3 + $0x20] sm:$0xff]  ;;  %v95_v27 = vld [vmem:[#allocation3 + $0x8] sm:$0xff]  ;;  %v194_v30 = vld [vmem:[#allocation5 + $0x38] sm:$0xff] }
  0x17   :  { %210 = vmatpush.msra.mxu3 %v199_v14  ;;  %v94_v28 = vld [vmem:[#allocation3] sm:$0xff]  ;;  %v193_v31 = vld [vmem:[#allocation5 + $0x30] sm:$0xff]  ;;  %v192_v32 = vld [vmem:[#allocation5 + $0x28] sm:$0xff] }
  0x18   :  { %115 = vmatpush.msra.mxu0 %v104_v11  ;;  %v469_v29 = vld [vmem:[%s493_s2] sm:$0xff]  ;;  %v190_v34 = vld [vmem:[#allocation5 + $0x18] sm:$0xff]  ;;  %v189_v35 = vld [vmem:[#allocation5 + $0x10] sm:$0xff] }
  0x19   :  { %211 = vmatpush.msra.mxu3 %v198_v17  ;;  %v191_v33 = vld [vmem:[#allocation5 + $0x20] sm:$0xff]  ;;  %v188_v36 = vld [vmem:[#allocation5 + $0x8] sm:$0xff]  ;;  %v243_v38 = vld [vmem:[#allocation7 + $0x78] sm:$0xff] }
  0x1a   :  { %116 = vmatpush.msra.mxu0 %v103_v12  ;;  %v187_v37 = vld [vmem:[#allocation5] sm:$0xff]  ;;  %v242_v39 = vld [vmem:[#allocation7 + $0x70] sm:$0xff]  ;;  %248 = vmatpush.msra.mxu2 %v243_v38  ;;  %v241_v40 = vld [vmem:[#allocation7 + $0x68] sm:$0xff] }
  0x1b   :  { %285 = vmatmul.msk.f32.vlgmr.msrb.gmra.mxu1 %vm156_vm1, %v154_v16  ;;  %212 = vmatpush.msra.mxu3 %v197_v19  ;;  %v240_v41 = vld [vmem:[#allocation7 + $0x60] sm:$0xff]  ;;  %v239_v42 = vld [vmem:[#allocation7 + $0x58] sm:$0xff]  ;;  %v238_v43 = vld [vmem:[#allocation7 + $0x50] sm:$0xff] }
  0x1c   :  { %117 = vmatpush.msra.mxu0 %v102_v15  ;;  %249 = vmatpush.msra.mxu2 %v242_v39  ;;  %v237_v44 = vld [vmem:[#allocation7 + $0x48] sm:$0xff]  ;;  %v236_v45 = vld [vmem:[#allocation7 + $0x40] sm:$0xff]  ;;  %v235_v47 = vld [vmem:[#allocation7 + $0x38] sm:$0xff] }
  0x1d   :  { %213 = vmatpush.msra.mxu3 %v196_v21  ;;  %v234_v48 = vld [vmem:[#allocation7 + $0x30] sm:$0xff]  ;;  %v233_v49 = vld [vmem:[#allocation7 + $0x28] sm:$0xff]  ;;  %v232_v50 = vld [vmem:[#allocation7 + $0x20] sm:$0xff] }
  0x1e   :  { %118 = vmatpush.msra.mxu0 %v101_v18  ;;  %250 = vmatpush.msra.mxu2 %v241_v40  ;;  %v231_v51 = vld [vmem:[#allocation7 + $0x18] sm:$0xff]  ;;  %v291_v55 = vld [vmem:[%s498_s7] ss:$0 sm:$0xff]  ;;  %v230_v59 = vld [vmem:[#allocation7 + $0x10] sm:$0xff] }
  0x1f   :  { %214 = vmatpush.msra.mxu3 %v195_v23  ;;  %v229_v60 = vld [vmem:[#allocation7 + $0x8] sm:$0xff]  ;;  %v228_v61 = vld [vmem:[#allocation7] sm:$0xff] }
  0x20   :  { %119 = vmatpush.msra.mxu0 %v100_v20  ;;  %251 = vmatpush.msra.mxu2 %v240_v41  ;;  %v292_v62 = vld [vmem:[%s500_s9] ss:$0 sm:$0xff]  ;;  %s273_s9 = ssub.f32 0.0, %s491_s0 }
  0x21   :  { %215 = vmatpush.msra.mxu3 %v194_v30  ;;  %v293_v2 = vld [vmem:[%s502_s11] ss:$0 sm:$0xff] }
  0x22   :  { %120 = vmatpush.msra.mxu0 %v99_v22  ;;  %252 = vmatpush.msra.mxu2 %v239_v42  ;;  %v274_v9 = vstv %s273_s9 }
  0x23   :  { %216 = vmatpush.msra.mxu3 %v193_v31 }
  0x24   :  { %121 = vmatpush.msra.mxu0 %v98_v24  ;;  %253 = vmatpush.msra.mxu2 %v238_v43 }
  0x25   :  { %217 = vmatpush.msra.mxu3 %v192_v32 }
  0x26   :  { %122 = vmatpush.msra.mxu0 %v97_v25  ;;  %254 = vmatpush.msra.mxu2 %v237_v44 }
  0x27   :  { %218 = vmatpush.msra.mxu3 %v191_v33 }
  0x28   :  { %123 = vmatpush.msra.mxu0 %v96_v26  ;;  %255 = vmatpush.msra.mxu2 %v236_v45 }
  0x29   :  { %219 = vmatpush.msra.mxu3 %v190_v34 }
  0x2a   :  { %124 = vmatpush.msra.mxu0 %v95_v27  ;;  %256 = vmatpush.msra.mxu2 %v235_v47 }
  0x2b   :  { %220 = vmatpush.msra.mxu3 %v189_v35 }
  0x2c   :  { %125 = vmatpush.msra.mxu0 %v94_v28  ;;  %257 = vmatpush.msra.mxu2 %v234_v48 }
  0x2d   :  { %126 = vmatmul.f32.vlgmr.msra.gmra.mxu0 %v469_v29  ;;  %221 = vmatpush.msra.mxu3 %v188_v36 }
  0x2e   :  { %258 = vmatpush.msra.mxu2 %v233_v49 }
  0x2f   :  { %222 = vmatpush.msra.mxu3 %v187_v37 }
  0x30   :  { %259 = vmatpush.msra.mxu2 %v232_v50 }
  0x32   :  { %260 = vmatpush.msra.mxu2 %v231_v51 }
  0x34   :  { %261 = vmatpush.msra.mxu2 %v230_v59 }
  0x36   :  { %262 = vmatpush.msra.mxu2 %v229_v60 }
  0x38   :  { %263 = vmatpush.msra.mxu2 %v228_v61 }
  0x90   :  { %v151_v46 = vpop.f32.mrf.mxu1 }
  0x98   :  { %v177_v53 = vpop.f32.mrf.mxu1 }
  0xaa   :  { %v127_v52 = vpop.f32.mrf.mxu0 }
  0xab   :  { %v152_v54 = vadd.f32 %v151_v46, %v127_v52 }
  0xad   :  { %v180_v56 = vadd.f32 %v177_v53, %v152_v54 }
  0xaf   :  { %v185_v57 = vadd.f32 %v291_v55, %v180_v56 }
  0xb1   :  { %v186_v58 = vmax.f32 %v185_v57, 0.0 }
  0xb3   :  { %223 = vmatmul.f32.vlgmr.msra.gmra.mxu3 %v186_v58 }
 0x136   :  { %v224_v63 = vpop.f32.mrf.mxu3 }
 0x137   :  { %v225_v0 = vadd.f32 %v292_v62, %v224_v63 }
 0x139   :  { %v227_v1 = vmax.f32 %v225_v0, 0.0 }
 0x13b   :  { %264 = vmatmul.f32.vlgmr.msra.gmra.mxu2 %v227_v1 }
 0x1be   :  { %v265_v3 = vpop.f32.mrf.mxu2 }
 0x1bf   :  { %v266_v4 = vadd.f32 %v293_v2, %v265_v3 }
 0x1c1   :  { %294 = vtanh.f32 %v266_v4 }
 0x1c7   :  { %v295_v6 = vpop.eup %294 }
 0x1c8   :  { %v270_v7 = vmul.f32 %v295_v6, %v269_v5 }
 0x1ca   :  { %v271_v8 = vmul.f32 0.05, %v270_v7 }
 0x1cc   :  { %v272_v10 = vadd.f32 %v271_v8, %v469_v29 }
 0x1ce   :  { %v275_v11 = vmax.f32 %v274_v9, %v272_v10 }
 0x1d0   :  { %v276_v12 = vmin.f32 %v269_v5, %v275_v11 }
 0x1d2   :  { %277 = vst [vmem:[%s503_s12] sm:$0xff] %v276_v12 }
 0x1d3   :  { %282 = vsyncpa [#allocation4], 1 }
 0x1d4   :  { %283 = vsyncpa [#allocation6], 1 }

</bundles_post_ra>
